<compile_context>
chip_gen: v7x
topology: tpu7x:2x2x1
jax: 0.10.0
libtpu: 0.0.40
codegen_flags: <defaults>
</compile_context>

<pallas_src>
import functools

import jax
import jax.numpy as jnp
from jax.experimental import pallas as pl
from jax.experimental.pallas import tpu as pltpu

LANE = 128
SUBLANE = 8


def _round_up(x, m):
    return ((x + m - 1) // m) * m


# ----------------------------------------------------------------------------
# Fused kernel: [Linear(no bias) -> BN(batch stats) -> LeakyReLU] * H -> Linear
# ----------------------------------------------------------------------------
def encoder_fused_kernel(*refs, num_hidden, eps, slope, inv_n):
    x_ref = refs[0]
    o_ref = refs[-1]
    p = refs[1:-1]  # per hidden layer: w, gamma, beta ; then w_out, b_out

    h = x_ref[...]                                            # [N, P0] f32
    i = 0
    for _ in range(num_hidden):
        w = p[i][...]          # [Pin, Pout]   (f32 or bf16)
        gamma = p[i + 1][...]  # [1, Pout]     f32
        beta = p[i + 2][...]   # [1, Pout]     f32
        i += 3

        # Linear without bias (bias cancels exactly under training-mode BN).
        y = jnp.dot(h.astype(w.dtype), w,
                    preferred_element_type=jnp.float32)       # MXU, f32 acc

        # BatchNorm1d (training-mode batch stats), single pass + one FMA.
        s = jnp.sum(y, axis=0, keepdims=True)                 # [1, Pout]
        ss = jnp.sum(y * y, axis=0, keepdims=True)            # [1, Pout]
        mean = s * inv_n
        var = ss * inv_n - mean * mean                        # biased var
        scale = gamma * jax.lax.rsqrt(var + eps)              # EUP rsqrt
        shift = beta - mean * scale
        z = y * scale + shift

        # LeakyReLU(negative_slope=slope), 0 < slope < 1.
        h = jnp.maximum(z, slope * z)
        # TODO(synk): dropout>0 (training-mode Bernoulli mask) not emitted;
        # module default dropout=0 is an identity.

    # OutputLayer: plain Linear (activation=False, normalization=False).
    w_out = p[i][...]
    b_out = p[i + 1][...]
    y = jnp.dot(h.astype(w_out.dtype), w_out,
                preferred_element_type=jnp.float32) + b_out
    o_ref[...] = y.astype(o_ref.dtype)


# ----------------------------------------------------------------------------
# One-time parameter padding (outside the per-call path)
# ----------------------------------------------------------------------------
def pad_encoder_params(params, matmul_dtype=jnp.float32):
    """Pad params to TPU-friendly shapes once.

    Lane (output) dims -> multiples of 128; first contraction dim -> multiple
    of 8 only. Hidden-layer biases are dropped (cancelled by BN). Weights may
    be pre-cast to `matmul_dtype` (bf16 on v6e/v7x); gamma/beta/out-bias stay
    f32 so all elementwise math remains f32 (v5e-safe).
    """
    num_hidden = len(params) - 1
    din = params[0]["w"].shape[0]
    din_pad = _round_up(din, SUBLANE)

    flat = []
    pdims = [din_pad]
    for li, layer in enumerate(params):
        d0, d1 = layer["w"].shape
        pin = pdims[-1]
        pout = _round_up(d1, LANE)
        pdims.append(pout)
        wp = jnp.pad(layer["w"], ((0, pin - d0), (0, pout - d1))).astype(matmul_dtype)
        if li < num_hidden:
            gp = jnp.pad(layer["gamma"], ((0, 0), (0, pout - d1)))
            btp = jnp.pad(layer["beta"], ((0, 0), (0, pout - d1)))
            flat += [wp, gp, btp]          # no hidden bias (BN cancels it)
        else:
            bp = jnp.pad(layer["b"], ((0, 0), (0, pout - d1)))
            flat += [wp, bp]

    meta = dict(num_hidden=num_hidden, din=din, din_pad=din_pad,
                latent_dim=params[-1]["w"].shape[1], out_pad=pdims[-1],
                pdims=tuple(pdims))
    return tuple(flat), meta


# ----------------------------------------------------------------------------
# Forward builder: jitted, single fused pallas_call, params pre-padded
# ----------------------------------------------------------------------------
def make_encoder_forward(flat_params, meta, *, leaky_slope=0.2, eps=1e-5):
    num_hidden = meta["num_hidden"]
    din, din_pad = meta["din"], meta["din_pad"]
    latent_dim, out_pad = meta["latent_dim"], meta["out_pad"]
    pdims = meta["pdims"]

    def forward(x):
        n = x.shape[0]
        xp = x.astype(jnp.float32)
        if din_pad != din:
            xp = jnp.pad(xp, ((0, 0), (0, din_pad - din)))

        flat_inputs = (xp,) + tuple(flat_params)

        # Honest cost estimate on the actual padded work.
        flops = sum(2 * n * pdims[i] * pdims[i + 1] for i in range(len(pdims) - 1))
        transcendentals = sum(pdims[i + 1] for i in range(num_hidden))
        in_bytes = sum(int(a.size) * a.dtype.itemsize for a in flat_inputs)
        out_bytes = n * out_pad * 4

        # VMEM budget: inputs + output + a few live activation slabs.
        act_bytes = 4 * n * max(pdims) * 4
        working = in_bytes + out_bytes + act_bytes
        vmem_limit = int(min(100 << 20, max(32 << 20, 2 * working)))

        full = pl.BlockSpec(memory_space=pltpu.VMEM)   # tiny model: fully VMEM-resident
        out_padded = pl.pallas_call(
            functools.partial(
                encoder_fused_kernel,
                num_hidden=num_hidden, eps=eps, slope=leaky_slope,
                inv_n=1.0 / n),
            out_shape=jax.ShapeDtypeStruct((n, out_pad), jnp.float32),
            in_specs=[full] * len(flat_inputs),
            out_specs=full,
            compiler_params=pltpu.CompilerParams(vmem_limit_bytes=vmem_limit),
            cost_estimate=pl.CostEstimate(
                flops=int(flops),
                transcendentals=int(transcendentals),
                bytes_accessed=int(in_bytes + out_bytes)),
        )(*flat_inputs)

        return out_padded[:, :latent_dim]

    return jax.jit(forward)


# ----------------------------------------------------------------------------
# Parameter init (PyTorch defaults) + pure-JAX reference
# ----------------------------------------------------------------------------
def init_encoder_params(key, input_dim, hidden_dim, latent_dim):
    """Linear weights/bias ~U(-1/sqrt(fan_in), 1/sqrt(fan_in)); BN gamma=1, beta=0."""
    dims = [input_dim] + list(hidden_dim) + [latent_dim]
    params = []
    for i in range(len(dims) - 1):
        din, dout = dims[i], dims[i + 1]
        key, kw, kb = jax.random.split(key, 3)
        bound = 1.0 / jnp.sqrt(jnp.float32(din))
        w = jax.random.uniform(kw, (din, dout), jnp.float32, -bound, bound)
        b = jax.random.uniform(kb, (1, dout), jnp.float32, -bound, bound)
        is_output = (i == len(dims) - 2)
        if is_output:
            params.append({"w": w, "b": b})
        else:
            params.append({"w": w, "b": b,
                           "gamma": jnp.ones((1, dout), jnp.float32),
                           "beta": jnp.zeros((1, dout), jnp.float32)})
    return params


def encoder_reference(params, x, *, leaky_slope=0.2, eps=1e-5):
    h = x
    for layer in params[:-1]:
        y = h @ layer["w"] + layer["b"]
        mean = jnp.mean(y, axis=0, keepdims=True)
        var = jnp.mean((y - mean) ** 2, axis=0, keepdims=True)
        z = layer["gamma"] * (y - mean) / jnp.sqrt(var + eps) + layer["beta"]
        h = jnp.where(z >= 0, z, leaky_slope * z)
    return h @ params[-1]["w"] + params[-1]["b"]


if __name__ == "__main__":
    # Small shapes consistent with the module's forward: x is [batch, input_dim].
    batch, input_dim = 8, 32
    hidden_dim = [64, 48]
    latent_dim = 16

    key = jax.random.PRNGKey(0)
    key, kx = jax.random.split(key)
    x = jax.random.normal(kx, (batch, input_dim), jnp.float32)

    params = init_encoder_params(key, input_dim, hidden_dim, latent_dim)
    ref = encoder_reference(params, x)

    # f32 matmul path (faithful to the f32 torch reference).
    flat32, meta = pad_encoder_params(params, matmul_dtype=jnp.float32)
    fwd_f32 = make_encoder_forward(flat32, meta)
    out = jax.block_until_ready(fwd_f32(x))
    assert out.shape == (batch, latent_dim)
    assert jnp.allclose(out, ref, atol=1e-3, rtol=1e-3), "f32 mismatch vs reference"

    # bf16 matmul operands (v6e/v7x MXU full-rate; v5e MXU also bf16-native);
    # all BN / LeakyReLU / rsqrt math stays f32. Loose tolerance vs f32 ref.
    flat16, meta16 = pad_encoder_params(params, matmul_dtype=jnp.bfloat16)
    fwd_bf16 = make_encoder_forward(flat16, meta16)
    out16 = jax.block_until_ready(fwd_bf16(x))
    assert out16.shape == (batch, latent_dim)
    assert float(jnp.max(jnp.abs(out16 - ref))) < 0.15, "bf16 path diverged"

    print("KERNEL_OK")
</pallas_src>

<mosaic_0001>
module attributes {stable_mosaic.version = 11 : i64} {
  func.func @encoder_fused_kernel(%arg0: memref<8x32xf32, #tpu.memory_space<vmem>>, %arg1: memref<32x128xf32, #tpu.memory_space<vmem>>, %arg2: memref<1x128xf32, #tpu.memory_space<vmem>>, %arg3: memref<1x128xf32, #tpu.memory_space<vmem>>, %arg4: memref<128x128xf32, #tpu.memory_space<vmem>>, %arg5: memref<1x128xf32, #tpu.memory_space<vmem>>, %arg6: memref<1x128xf32, #tpu.memory_space<vmem>>, %arg7: memref<128x128xf32, #tpu.memory_space<vmem>>, %arg8: memref<1x128xf32, #tpu.memory_space<vmem>>, %arg9: memref<8x128xf32, #tpu.memory_space<vmem>>) attributes {dimension_semantics = [], scalar_prefetch = 0 : i64, scratch_operands = 0 : i64, tpu.core_type = #tpu.core_type<tc>} {
    %c0 = arith.constant 0 : index
    %c0_0 = arith.constant 0 : index
    %0 = vector.load %arg0[%c0, %c0_0] : memref<8x32xf32, #tpu.memory_space<vmem>>, vector<8x32xf32>
    %c0_1 = arith.constant 0 : index
    %c0_2 = arith.constant 0 : index
    %1 = vector.load %arg1[%c0_1, %c0_2] : memref<32x128xf32, #tpu.memory_space<vmem>>, vector<32x128xf32>
    %c0_3 = arith.constant 0 : index
    %c0_4 = arith.constant 0 : index
    %2 = vector.load %arg2[%c0_3, %c0_4] : memref<1x128xf32, #tpu.memory_space<vmem>>, vector<1x128xf32>
    %c0_5 = arith.constant 0 : index
    %c0_6 = arith.constant 0 : index
    %3 = vector.load %arg3[%c0_5, %c0_6] : memref<1x128xf32, #tpu.memory_space<vmem>>, vector<1x128xf32>
    %cst = arith.constant dense<0.000000e+00> : vector<8x128xf32>
    %4 = tpu.matmul %0, %1, %cst {dimension_numbers = #tpu.dot_dimension_numbers<[1], [0], [0], [1], [0, 0, 1, 1], [], []>} : vector<8x32xf32>, vector<32x128xf32>, vector<8x128xf32> -> vector<8x128xf32>
    %cst_7 = arith.constant dense<0.000000e+00> : vector<128xf32>
    %5 = vector.multi_reduction <add>, %4, %cst_7 [0] : vector<8x128xf32> to vector<128xf32>
    %6 = vector.shape_cast %5 : vector<128xf32> to vector<1x128xf32>
    %7 = arith.mulf %4, %4 : vector<8x128xf32>
    %cst_8 = arith.constant dense<0.000000e+00> : vector<128xf32>
    %8 = vector.multi_reduction <add>, %7, %cst_8 [0] : vector<8x128xf32> to vector<128xf32>
    %9 = vector.shape_cast %8 : vector<128xf32> to vector<1x128xf32>
    %cst_9 = arith.constant 1.250000e-01 : f32
    %10 = vector.broadcast %cst_9 : f32 to vector<1x128xf32>
    %11 = arith.mulf %6, %10 : vector<1x128xf32>
    %cst_10 = arith.constant 1.250000e-01 : f32
    %12 = vector.broadcast %cst_10 : f32 to vector<1x128xf32>
    %13 = arith.mulf %9, %12 : vector<1x128xf32>
    %14 = arith.mulf %11, %11 : vector<1x128xf32>
    %15 = arith.subf %13, %14 : vector<1x128xf32>
    %cst_11 = arith.constant 9.99999974E-6 : f32
    %16 = vector.broadcast %cst_11 : f32 to vector<1x128xf32>
    %17 = arith.addf %15, %16 : vector<1x128xf32>
    %18 = math.rsqrt %17 : vector<1x128xf32>
    %19 = arith.mulf %2, %18 : vector<1x128xf32>
    %20 = arith.mulf %11, %19 : vector<1x128xf32>
    %21 = arith.subf %3, %20 : vector<1x128xf32>
    %22 = vector.broadcast %19 : vector<1x128xf32> to vector<8x128xf32>
    %23 = arith.mulf %4, %22 : vector<8x128xf32>
    %24 = vector.broadcast %21 : vector<1x128xf32> to vector<8x128xf32>
    %25 = arith.addf %23, %24 : vector<8x128xf32>
    %cst_12 = arith.constant 2.000000e-01 : f32
    %26 = vector.broadcast %cst_12 : f32 to vector<8x128xf32>
    %27 = arith.mulf %26, %25 : vector<8x128xf32>
    %28 = arith.maximumf %25, %27 : vector<8x128xf32>
    %c0_13 = arith.constant 0 : index
    %c0_14 = arith.constant 0 : index
    %29 = vector.load %arg4[%c0_13, %c0_14] : memref<128x128xf32, #tpu.memory_space<vmem>>, vector<128x128xf32>
    %c0_15 = arith.constant 0 : index
    %c0_16 = arith.constant 0 : index
    %30 = vector.load %arg5[%c0_15, %c0_16] : memref<1x128xf32, #tpu.memory_space<vmem>>, vector<1x128xf32>
    %c0_17 = arith.constant 0 : index
    %c0_18 = arith.constant 0 : index
    %31 = vector.load %arg6[%c0_17, %c0_18] : memref<1x128xf32, #tpu.memory_space<vmem>>, vector<1x128xf32>
    %cst_19 = arith.constant dense<0.000000e+00> : vector<8x128xf32>
    %32 = tpu.matmul %28, %29, %cst_19 {dimension_numbers = #tpu.dot_dimension_numbers<[1], [0], [0], [1], [0, 0, 1, 1], [], []>} : vector<8x128xf32>, vector<128x128xf32>, vector<8x128xf32> -> vector<8x128xf32>
    %cst_20 = arith.constant dense<0.000000e+00> : vector<128xf32>
    %33 = vector.multi_reduction <add>, %32, %cst_20 [0] : vector<8x128xf32> to vector<128xf32>
    %34 = vector.shape_cast %33 : vector<128xf32> to vector<1x128xf32>
    %35 = arith.mulf %32, %32 : vector<8x128xf32>
    %cst_21 = arith.constant dense<0.000000e+00> : vector<128xf32>
    %36 = vector.multi_reduction <add>, %35, %cst_21 [0] : vector<8x128xf32> to vector<128xf32>
    %37 = vector.shape_cast %36 : vector<128xf32> to vector<1x128xf32>
    %cst_22 = arith.constant 1.250000e-01 : f32
    %38 = vector.broadcast %cst_22 : f32 to vector<1x128xf32>
    %39 = arith.mulf %34, %38 : vector<1x128xf32>
    %cst_23 = arith.constant 1.250000e-01 : f32
    %40 = vector.broadcast %cst_23 : f32 to vector<1x128xf32>
    %41 = arith.mulf %37, %40 : vector<1x128xf32>
    %42 = arith.mulf %39, %39 : vector<1x128xf32>
    %43 = arith.subf %41, %42 : vector<1x128xf32>
    %cst_24 = arith.constant 9.99999974E-6 : f32
    %44 = vector.broadcast %cst_24 : f32 to vector<1x128xf32>
    %45 = arith.addf %43, %44 : vector<1x128xf32>
    %46 = math.rsqrt %45 : vector<1x128xf32>
    %47 = arith.mulf %30, %46 : vector<1x128xf32>
    %48 = arith.mulf %39, %47 : vector<1x128xf32>
    %49 = arith.subf %31, %48 : vector<1x128xf32>
    %50 = vector.broadcast %47 : vector<1x128xf32> to vector<8x128xf32>
    %51 = arith.mulf %32, %50 : vector<8x128xf32>
    %52 = vector.broadcast %49 : vector<1x128xf32> to vector<8x128xf32>
    %53 = arith.addf %51, %52 : vector<8x128xf32>
    %cst_25 = arith.constant 2.000000e-01 : f32
    %54 = vector.broadcast %cst_25 : f32 to vector<8x128xf32>
    %55 = arith.mulf %54, %53 : vector<8x128xf32>
    %56 = arith.maximumf %53, %55 : vector<8x128xf32>
    %c0_26 = arith.constant 0 : index
    %c0_27 = arith.constant 0 : index
    %57 = vector.load %arg7[%c0_26, %c0_27] : memref<128x128xf32, #tpu.memory_space<vmem>>, vector<128x128xf32>
    %c0_28 = arith.constant 0 : index
    %c0_29 = arith.constant 0 : index
    %58 = vector.load %arg8[%c0_28, %c0_29] : memref<1x128xf32, #tpu.memory_space<vmem>>, vector<1x128xf32>
    %cst_30 = arith.constant dense<0.000000e+00> : vector<8x128xf32>
    %59 = tpu.matmul %56, %57, %cst_30 {dimension_numbers = #tpu.dot_dimension_numbers<[1], [0], [0], [1], [0, 0, 1, 1], [], []>} : vector<8x128xf32>, vector<128x128xf32>, vector<8x128xf32> -> vector<8x128xf32>
    %60 = vector.broadcast %58 : vector<1x128xf32> to vector<8x128xf32>
    %61 = arith.addf %59, %60 : vector<8x128xf32>
    %c0_31 = arith.constant 0 : index
    %c0_32 = arith.constant 0 : index
    %62 = vector.load %arg9[%c0_31, %c0_32] : memref<8x128xf32, #tpu.memory_space<vmem>>, vector<8x128xf32>
    tpu.vector_store %arg9[%c0_31, %c0_32], %61 {strides = array<i32>} : memref<8x128xf32, #tpu.memory_space<vmem>>, vector<8x128xf32>,
    return
  }
}

</mosaic_0001>

<bundles_post_ra>
// kernel: forward.1
= control target key start
LH: loop header
LB: loop body
LE: loop exit
PB: predicated region body
PF: predicated region fallthrough
CT: control target
= control target key end

     0   :  { %14 = vsyncpa [#allocation3], 0  ;;  %s921_s0 = inlined_call_operand.hbm [shape: f32[8,32], index: 0, kind: input, shape index: {}]   ;;  %s922_s1 = inlined_call_operand.hbm [shape: f32[32,128], index: 1, kind: input, shape index: {}]   ;;  %s923_s2 = inlined_call_operand.vmem [shape: f32[1,128], index: 2, kind: input, shape index: {}]   ;;  %s924_s3 = inlined_call_operand.vmem [shape: f32[1,128], index: 3, kind: input, shape index: {}, may-alias: {3,6}]   ;;  %s925_s4 = inlined_call_operand.hbm [shape: f32[128,128], index: 4, kind: input, shape index: {}]   ;;  %s926_s5 = inlined_call_operand.vmem [shape: f32[1,128], index: 5, kind: input, shape index: {}]   ;;  %s927_s6 = inlined_call_operand.vmem [shape: f32[1,128], index: 6, kind: input, shape index: {}, may-alias: {3,6}]   ;;  %s928_s7 = inlined_call_operand.hbm [shape: f32[128,128], index: 7, kind: input, shape index: {}]   ;;  %s929_s8 = inlined_call_operand.vmem [shape: f32[1,128], index: 8, kind: input, shape index: {}]   ;;  %s930_s9 = inlined_call_operand.hbm [shape: f32[8,128], index: 9, kind: output, shape index: {}]  }
   0x1   :  { %15 = vsyncpa [#allocation6], 0 }
   0x2   :  { %16 = vsyncpa [#allocation9], 0 }
   0x3   :  { %17 = vsyncpa [#allocation4], 0  ;;  %s750_s30 = smov [#allocation5]   ;;  %s632_s13 = scalar_lea.hbm %s922_s1, 512 }
   0x4   :  { %s33_s10 = sshll.u32 %s750_s30, 4  ;;  %p633_p0 = scmp.ne.s32.totalorder %s922_s1, %s632_s13  ;;  %s34_s10 = int_to_ptr.vmem [resolvable:$true] %s33_s10 }
   0x5   :  { %p636_p1 = scmp.lt.u32.totalorder %s632_s13, %s922_s1 }
   0x7   :  { %p638_p2 = pnand %p636_p1, %p633_p0 }
   0x9   :  { %641 = shalt.err (!%p638_p2)
}
   0xa   :  { %s642_s18 = scalar_lea.vmem %s34_s10, 512  ;;  %p647_p4 = scmp.lt.s32.totalorder %s34_s10, %s34_s10 }
   0xb   :  { %p643_p3 = scmp.ne.s32.totalorder %s34_s10, %s642_s18  ;;  %p648_p5 = scmp.lt.s32.totalorder %s642_s18, %s642_s18 }
   0xd   :  { %p649_p6 = por %p648_p5, %p647_p4 }
   0xf   :  { %p650_p7 = pnand %p649_p6, %p643_p3 }
  0x11   :  { %653 = shalt.err (!%p650_p7)
}
  0x12   :  { %s751_s19 = smov 128   ;;  %s752_s20 = smov 8  }
  0x13   :  { %39 = dma.hbm_to_vmem [thread:$0]  %s922_s1, 512, %s34_s10, [#allocation6], %s751_s19, %s751_s19, %s752_s20  }
  0x14   :  { %s753_s23 = smov [#allocation2]   ;;  %s754_s25 = smov [#allocation7]  }
  0x15   :  { %s24_s24 = sshll.u32 %s753_s23, 4  ;;  %s49_s26 = sshll.u32 %s754_s25, 4  ;;  %s25_s24 = int_to_ptr.vmem [resolvable:$true] %s24_s24  ;;  %s50_s26 = int_to_ptr.vmem [resolvable:$true] %s49_s26 }
  0x16   :  { %s654_s29 = scalar_lea.hbm %s921_s0, 128 }
  0x17   :  { %p655_p8 = scmp.ne.s32.totalorder %s921_s0, %s654_s29  ;;  %p658_p9 = scmp.lt.u32.totalorder %s654_s29, %s921_s0 }
  0x19   :  { %p660_p10 = pnand %p658_p9, %p655_p8 }
  0x1b   :  { %663 = shalt.err (!%p660_p10)
}
  0x1c   :  { %s664_s1 = scalar_lea.vmem %s25_s24, 128  ;;  %p669_p12 = scmp.lt.s32.totalorder %s25_s24, %s25_s24 }
  0x1d   :  { %p665_p11 = scmp.ne.s32.totalorder %s25_s24, %s664_s1  ;;  %p670_p13 = scmp.lt.s32.totalorder %s664_s1, %s664_s1 }
  0x1f   :  { %p671_p0 = por %p670_p13, %p669_p12 }
  0x21   :  { %p672_p1 = pnand %p671_p0, %p665_p11 }
  0x23   :  { %675 = shalt.err (!%p672_p1)
}
  0x24   :  { %27 = dma.hbm_to_vmem [thread:$0]  %s921_s0, 128, %s25_s24, [#allocation3]  }
  0x25   :  { %s676_s17 = scalar_lea.hbm %s925_s4, 2048 }
  0x26   :  { %p677_p2 = scmp.ne.s32.totalorder %s925_s4, %s676_s17  ;;  %p680_p3 = scmp.lt.u32.totalorder %s676_s17, %s925_s4 }
  0x28   :  { %p682_p4 = pnand %p680_p3, %p677_p2 }
  0x2a   :  { %685 = shalt.err (!%p682_p4)
}
  0x2b   :  { %s686_s25 = scalar_lea.vmem %s50_s26, 2048  ;;  %p691_p6 = scmp.lt.s32.totalorder %s50_s26, %s50_s26 }
  0x2c   :  { %p687_p5 = scmp.ne.s32.totalorder %s50_s26, %s686_s25  ;;  %p692_p7 = scmp.lt.s32.totalorder %s686_s25, %s686_s25 }
  0x2e   :  { %p693_p8 = por %p692_p7, %p691_p6 }
  0x30   :  { %p694_p9 = pnand %p693_p8, %p687_p5 }
  0x32   :  { %697 = shalt.err (!%p694_p9)
}
  0x33   :  { %55 = dma.hbm_to_vmem [thread:$0]  %s925_s4, 2048, %s50_s26, [#allocation6], %s751_s19, %s751_s19, %s752_s20  }
  0x34   :  { %s755_s27 = smov [#allocation8]   ;;  %s698_s11 = scalar_lea.hbm %s928_s7, 2048 }
  0x35   :  { %s65_s28 = sshll.u32 %s755_s27, 4  ;;  %p699_p10 = scmp.ne.s32.totalorder %s928_s7, %s698_s11  ;;  %s66_s28 = int_to_ptr.vmem [resolvable:$true] %s65_s28 }
  0x36   :  { %p702_p11 = scmp.lt.u32.totalorder %s698_s11, %s928_s7 }
  0x38   :  { %p704_p12 = pnand %p702_p11, %p699_p10 }
  0x3a   :  { %707 = shalt.err (!%p704_p12)
}
  0x3b   :  { %s708_s14 = scalar_lea.vmem %s66_s28, 2048  ;;  %p713_p0 = scmp.lt.s32.totalorder %s66_s28, %s66_s28 }
  0x3c   :  { %p709_p13 = scmp.ne.s32.totalorder %s66_s28, %s708_s14  ;;  %p714_p1 = scmp.lt.s32.totalorder %s708_s14, %s708_s14 }
  0x3e   :  { %p715_p2 = por %p714_p1, %p713_p0 }
  0x40   :  { %p716_p3 = pnand %p715_p2, %p709_p13 }
  0x42   :  { %719 = shalt.err (!%p716_p3)
}
  0x43   :  { %71 = dma.hbm_to_vmem [thread:$0]  %s928_s7, 2048, %s66_s28, [#allocation9], %s751_s19, %s751_s19, %s752_s20  }
  0x44   :  { %742 = dma.done.wait [#allocation3], 128  }
  0x45   :  { %743 = vsyncadd [#allocation3], 4294967168 }
  0x46   :  { %744 = dma.done.wait [#allocation6], 2560  }
  0x47   :  { %745 = vsyncadd [#allocation6], 4294964736 }
  0x48   :  { %746 = dma.done.wait [#allocation9], 2048  }
  0x49   :  { %747 = vsyncadd [#allocation9], 4294965248  ;;  %v756_v0 = vmov 0.0|0.0   ;;  %vm757_vm0 = vmmov 0   ;;  %v758_v1 = vmov 0.0   ;;  %v87_v2 = vld [vmem:[#allocation5] sm:$0xff]  ;;  %v190_v53 = vlaneseq }
  0x4a   :  { %564 = vmatprep.subr.bf16.mxu0 %v756_v0  ;;  %491 = vmatprep.mubr.msk.f32.mxu0 %vm757_vm0, %v758_v1  ;;  %v88_v3 = vld [vmem:[#allocation5 + $0x8] sm:$0xff]  ;;  %v89_v4 = vld [vmem:[#allocation5 + $0x10] sm:$0xff]  ;;  %v90_v6 = vld [vmem:[#allocation5 + $0x18] sm:$0xff]  ;;  %vm93_vm1 = vcmask 261120  }
  0x4b   :  { %570 = vmatprep.subr.bf16.mxu1 %v756_v0  ;;  %526 = vmatprep.mubr.msk.f32.mxu1 %vm757_vm0, %v758_v1  ;;  %v565_v5 = vpack.c.bf16 %v88_v3, %v87_v2  ;;  %v568_v7 = vpack.c.bf16 %v90_v6, %v89_v4  ;;  %v86_v8 = vld [vmem:[#allocation2] sm:$0xff]  ;;  %v205_v9 = vld [vmem:[#allocation7] sm:$0xff]  ;;  %v206_v10 = vld [vmem:[#allocation7 + $0x8] sm:$0xff]  ;;  %v191_v54 = vshrl.u32 %v190_v53, 7 }
  0x4c   :  { %v571_v11 = vpack.c.bf16 %v206_v10, %v205_v9  ;;  %v207_v12 = vld [vmem:[#allocation7 + $0x10] sm:$0xff]  ;;  %v208_v13 = vld [vmem:[#allocation7 + $0x18] sm:$0xff]  ;;  %v209_v15 = vld [vmem:[#allocation7 + $0x20] sm:$0xff] }
  0x4d   :  { %566 = vmatpush3.bf16.msra.mxu0 %v565_v5  ;;  %v574_v14 = vpack.c.bf16 %v208_v13, %v207_v12  ;;  %v210_v16 = vld [vmem:[#allocation7 + $0x28] sm:$0xff]  ;;  %v211_v18 = vld [vmem:[#allocation7 + $0x30] sm:$0xff]  ;;  %v212_v19 = vld [vmem:[#allocation7 + $0x38] sm:$0xff]  ;;  %v884_v56 = vsub.s32 0, %v191_v54 }
  0x4e   :  { %567 = vmatprep.subr.bf16.mxu0 %v756_v0  ;;  %572 = vmatpush3.bf16.msra.mxu1 %v571_v11  ;;  %v577_v17 = vpack.c.bf16 %v210_v16, %v209_v15  ;;  %v580_v20 = vpack.c.bf16 %v212_v19, %v211_v18  ;;  %v213_v21 = vld [vmem:[#allocation7 + $0x40] sm:$0xff]  ;;  %v214_v22 = vld [vmem:[#allocation7 + $0x48] sm:$0xff]  ;;  %v215_v24 = vld [vmem:[#allocation7 + $0x50] sm:$0xff] }
  0x4f   :  { %573 = vmatprep.subr.bf16.mxu1 %v756_v0  ;;  %v583_v23 = vpack.c.bf16 %v214_v22, %v213_v21  ;;  %v216_v25 = vld [vmem:[#allocation7 + $0x58] sm:$0xff]  ;;  %v217_v27 = vld [vmem:[#allocation7 + $0x60] sm:$0xff]  ;;  %v218_v28 = vld [vmem:[#allocation7 + $0x68] sm:$0xff] }
  0x50   :  { %v586_v26 = vpack.c.bf16 %v216_v25, %v215_v24  ;;  %v219_v29 = vld [vmem:[#allocation7 + $0x70] sm:$0xff]  ;;  %v589_v30 = vpack.c.bf16 %v218_v28, %v217_v27  ;;  %v220_v31 = vld [vmem:[#allocation7 + $0x78] sm:$0xff]  ;;  %v331_v5 = vld [vmem:[#allocation8] sm:$0xff] }
  0x51   :  { %569 = vmatpush3.bf16.msra.mxu0 %v568_v7  ;;  %v592_v32 = vpack.c.bf16 %v220_v31, %v219_v29  ;;  %v91_v55 = vld [vmem:[%s923_s2] sm:$0x1]  ;;  %v332_v6 = vld [vmem:[#allocation8 + $0x8] sm:$0xff]  ;;  %v335_v11 = vld [vmem:[#allocation8 + $0x20] sm:$0xff] }
  0x52   :  { %594 = vmatprep.subr.bf16.mxu0 %v756_v0  ;;  %575 = vmatpush3.bf16.msra.mxu1 %v574_v14  ;;  %v92_v59 = vld [vmem:[%s924_s3] sm:$0x1]  ;;  %v595_v7 = vpack.c.bf16 %v332_v6, %v331_v5  ;;  %v336_v12 = vld [vmem:[#allocation8 + $0x28] sm:$0xff]  ;;  %v337_v14 = vld [vmem:[#allocation8 + $0x30] sm:$0xff] }
  0x53   :  { %576 = vmatprep.subr.bf16.mxu1 %v756_v0  ;;  %v334_v9 = vld [vmem:[#allocation8 + $0x18] sm:$0xff]  ;;  %v601_v13 = vpack.c.bf16 %v336_v12, %v335_v11  ;;  %v340_v18 = vld [vmem:[#allocation8 + $0x48] sm:$0xff] }
  0x54   :  { %492 = vmatmul.mubr.msk.f32.vlgmr.msra.gmra.mrb[0].mxu0 %vm93_vm1, %v86_v8  ;;  %v333_v8 = vld [vmem:[#allocation8 + $0x10] sm:$0xff]  ;;  %v338_v15 = vld [vmem:[#allocation8 + $0x38] sm:$0xff]  ;;  %v344_v24 = vld [vmem:[#allocation8 + $0x68] sm:$0xff] }
  0x55   :  { %561 = vmatprep.mubr.msk.f32.mxu0 %vm757_vm0, %v758_v1  ;;  %596 = vmatpush3.bf16.msra.mxu0 %v595_v7  ;;  %v598_v10 = vpack.c.bf16 %v334_v9, %v333_v8  ;;  %v604_v16 = vpack.c.bf16 %v338_v15, %v337_v14  ;;  %v342_v21 = vld [vmem:[#allocation8 + $0x58] sm:$0xff] }
  0x56   :  { %578 = vmatpush3.bf16.msra.mxu1 %v577_v17  ;;  %597 = vmatprep.subr.bf16.mxu0 %v756_v0  ;;  %v339_v17 = vld [vmem:[#allocation8 + $0x40] sm:$0xff]  ;;  %v346_v27 = vld [vmem:[#allocation8 + $0x78] sm:$0xff] }
  0x57   :  { %579 = vmatprep.subr.bf16.mxu1 %v756_v0  ;;  %v607_v19 = vpack.c.bf16 %v340_v18, %v339_v17 }
  0x59   :  { %599 = vmatpush3.bf16.msra.mxu0 %v598_v10 }
  0x5a   :  { %581 = vmatpush3.bf16.msra.mxu1 %v580_v20  ;;  %600 = vmatprep.subr.bf16.mxu0 %v756_v0  ;;  %v341_v20 = vld [vmem:[#allocation8 + $0x50] sm:$0xff] }
  0x5b   :  { %582 = vmatprep.subr.bf16.mxu1 %v756_v0  ;;  %v610_v22 = vpack.c.bf16 %v342_v21, %v341_v20 }
  0x5d   :  { %602 = vmatpush3.bf16.msra.mxu0 %v601_v13 }
  0x5e   :  { %584 = vmatpush3.bf16.msra.mxu1 %v583_v23  ;;  %603 = vmatprep.subr.bf16.mxu0 %v756_v0  ;;  %v343_v23 = vld [vmem:[#allocation8 + $0x60] sm:$0xff] }
  0x5f   :  { %585 = vmatprep.subr.bf16.mxu1 %v756_v0  ;;  %v613_v25 = vpack.c.bf16 %v344_v24, %v343_v23 }
  0x61   :  { %605 = vmatpush3.bf16.msra.mxu0 %v604_v16 }
  0x62   :  { %587 = vmatpush3.bf16.msra.mxu1 %v586_v26  ;;  %606 = vmatprep.subr.bf16.mxu0 %v756_v0  ;;  %v345_v26 = vld [vmem:[#allocation8 + $0x70] sm:$0xff] }
  0x63   :  { %588 = vmatprep.subr.bf16.mxu1 %v756_v0  ;;  %v616_v28 = vpack.c.bf16 %v346_v27, %v345_v26 }
  0x65   :  { %608 = vmatpush3.bf16.msra.mxu0 %v607_v19 }
  0x66   :  { %590 = vmatpush3.bf16.msra.mxu1 %v589_v30  ;;  %609 = vmatprep.subr.bf16.mxu0 %v756_v0 }
  0x67   :  { %591 = vmatprep.subr.bf16.mxu1 %v756_v0 }
  0x69   :  { %611 = vmatpush3.bf16.msra.mxu0 %v610_v22 }
  0x6a   :  { %593 = vmatpush3.bf16.msra.mxu1 %v592_v32  ;;  %612 = vmatprep.subr.bf16.mxu0 %v756_v0 }
  0x6d   :  { %614 = vmatpush3.bf16.msra.mxu0 %v613_v25 }
  0x6e   :  { %615 = vmatprep.subr.bf16.mxu0 %v756_v0 }
  0x71   :  { %617 = vmatpush3.bf16.msra.mxu0 %v616_v28 }
 0x127   :  { %v163_v33 = vpop.f32.mrb[0].mxu0 }
 0x128   :  { %v167_v34 = vrot.slane %v163_v33, 4  ;;  %v173_v35 = vmul.f32 %v163_v33, %v163_v33  ;;  %v493_v36 = vpop.f32.mrb[1].mxu0 }
 0x12a   :  { %v168_v37 = vadd.f32 %v167_v34, %v163_v33  ;;  %v174_v38 = vrot.slane %v173_v35, 4 }
 0x12c   :  { %v169_v39 = vrot.slane %v168_v37, 2  ;;  %v175_v40 = vadd.f32 %v174_v38, %v173_v35 }
 0x12e   :  { %v170_v41 = vadd.f32 %v169_v39, %v168_v37  ;;  %v176_v42 = vrot.slane %v175_v40, 2 }
 0x130   :  { %v171_v43 = vrot.slane %v170_v41, 1  ;;  %v177_v44 = vadd.f32 %v176_v42, %v175_v40 }
 0x132   :  { %v172_v45 = vadd.f32 %v171_v43, %v170_v41  ;;  %v178_v46 = vrot.slane %v177_v44, 1 }
 0x134   :  { %v179_v47 = vadd.f32 %v178_v46, %v177_v44  ;;  %v180_v48 = vmul.f32 0.125, %v172_v45 }
 0x136   :  { %v181_v49 = vmul.f32 0.125, %v179_v47  ;;  %v182_v50 = vmul.f32 %v180_v48, %v180_v48 }
 0x138   :  { %v183_v51 = vsub.f32 %v181_v49, %v182_v50 }
 0x13a   :  { %v184_v52 = vadd.f32 1e-05, %v183_v51  ;;  %v222_v51 = vld [vmem:[%s927_s6] sm:$0x1] }
 0x13c   :  { %628 = vrsqrt.f32 %v184_v52 }
 0x146   :  { %v629_v57 = vpop.eup %628 }
 0x147   :  { %v186_v58 = vmul.f32 %v629_v57, %v91_v55 }
 0x149   :  { %v187_v60 = vmul.f32 %v186_v58, %v180_v48  ;;  %v193_v61 = vrot.slane %v186_v58, %v884_v56  ;;  %v221_v48 = vld [vmem:[%s926_s5] sm:$0x1]  ;;  %s759_s5 = smov [#allocation10]  }
 0x14a   :  { %s431_s22 = sshll.u32 %s759_s5, 4  ;;  %s432_s22 = int_to_ptr.vmem [resolvable:$true] %s431_s22 }
 0x14b   :  { %v188_v62 = vsub.f32 %v92_v59, %v187_v60  ;;  %v195_v63 = vmul.f32 %v193_v61, %v163_v33  ;;  %v443_v61 = vld [vmem:[%s929_s8] ss:$0 sm:$0xff]  ;;  %s720_s6 = scalar_lea.vmem %s432_s22, 128  ;;  %p725_p5 = scmp.lt.s32.totalorder %s432_s22, %s432_s22 }
 0x14c   :  { %p721_p4 = scmp.ne.s32.totalorder %s432_s22, %s720_s6  ;;  %p726_p6 = scmp.lt.s32.totalorder %s720_s6, %s720_s6 }
 0x14d   :  { %v200_v1 = vrot.slane %v188_v62, %v884_v56 }
 0x14e   :  { %p727_p7 = por %p726_p6, %p725_p5 }
 0x14f   :  { %v202_v2 = vadd.f32 %v200_v1, %v195_v63 }
 0x150   :  { %p728_p8 = pnand %p727_p7, %p721_p4 }
 0x151   :  { %v203_v3 = vmul.f32 0.2, %v202_v2 }
 0x153   :  { %v204_v4 = vmax.f32 %v202_v2, %v203_v3 }
 0x155   :  { %527 = vmatmul.mubr.f32.vlgmr.msra.gmra.mrb[0].mxu1 %v204_v4 }
 0x228   :  { %v289_v29 = vpop.f32.mrb[0].mxu1 }
 0x229   :  { %v293_v30 = vrot.slane %v289_v29, 4  ;;  %v299_v31 = vmul.f32 %v289_v29, %v289_v29  ;;  %v528_v32 = vpop.f32.mrb[1].mxu1 }
 0x22b   :  { %v294_v33 = vadd.f32 %v293_v30, %v289_v29  ;;  %v300_v34 = vrot.slane %v299_v31, 4 }
 0x22d   :  { %v295_v35 = vrot.slane %v294_v33, 2  ;;  %v301_v36 = vadd.f32 %v300_v34, %v299_v31 }
 0x22f   :  { %v296_v37 = vadd.f32 %v295_v35, %v294_v33  ;;  %v302_v38 = vrot.slane %v301_v36, 2 }
 0x231   :  { %v297_v39 = vrot.slane %v296_v37, 1  ;;  %v303_v40 = vadd.f32 %v302_v38, %v301_v36 }
 0x233   :  { %v298_v41 = vadd.f32 %v297_v39, %v296_v37  ;;  %v304_v42 = vrot.slane %v303_v40, 1 }
 0x235   :  { %v305_v43 = vadd.f32 %v304_v42, %v303_v40  ;;  %v306_v0 = vmul.f32 0.125, %v298_v41 }
 0x237   :  { %v307_v44 = vmul.f32 0.125, %v305_v43  ;;  %v308_v45 = vmul.f32 %v306_v0, %v306_v0 }
 0x239   :  { %v309_v46 = vsub.f32 %v307_v44, %v308_v45 }
 0x23b   :  { %v310_v47 = vadd.f32 1e-05, %v309_v46 }
 0x23d   :  { %630 = vrsqrt.f32 %v310_v47 }
 0x247   :  { %v631_v49 = vpop.eup %630 }
 0x248   :  { %v312_v50 = vmul.f32 %v631_v49, %v221_v48 }
 0x24a   :  { %v313_v52 = vmul.f32 %v312_v50, %v306_v0  ;;  %v319_v53 = vrot.slane %v312_v50, %v884_v56 }
 0x24c   :  { %v314_v54 = vsub.f32 %v222_v51, %v313_v52  ;;  %v321_v55 = vmul.f32 %v319_v53, %v289_v29 }
 0x24e   :  { %v326_v57 = vrot.slane %v314_v54, %v884_v56 }
 0x250   :  { %v328_v58 = vadd.f32 %v326_v57, %v321_v55 }
 0x252   :  { %v329_v59 = vmul.f32 0.2, %v328_v58 }
 0x254   :  { %v330_v60 = vmax.f32 %v328_v58, %v329_v59 }
 0x256   :  { %562 = vmatmul.mubr.f32.vlgmr.msra.gmra.mrb[2].mxu0 %v330_v60 }
 0x329   :  { %v420_v62 = vpop.f32.mrb[2].mxu0 }
 0x32a   :  { %v421_v63 = vadd.f32 %v443_v61, %v420_v62  ;;  %v563_v1 = vpop.f32.mrb[3].mxu0 }
 0x32c   :  { %424 = vst [vmem:[#allocation10] sm:$0xff] %v421_v63 }
 0x32d   :  { %731 = shalt.err (!%p728_p8)
}
 0x32e   :  { %s732_s0 = scalar_lea.hbm %s930_s9, 128 }
 0x32f   :  { %p733_p9 = scmp.ne.s32.totalorder %s930_s9, %s732_s0  ;;  %p736_p10 = scmp.lt.u32.totalorder %s732_s0, %s930_s9 }
 0x331   :  { %p738_p11 = pnand %p736_p10, %p733_p9 }
 0x333   :  { %741 = shalt.err (!%p738_p11)
}
 0x334   :  { %434 = dma.vmem_to_hbm [thread:$0]  %s432_s22, 128, %s930_s9, [#allocation4]  }
 0x335   :  { %748 = dma.done.wait [#allocation4], 128  }
 0x336   :  { %749 = vsyncadd [#allocation4], 4294967168 }
 0x337   :  { %438 = vsyncpa [#allocation3], 1 }
 0x338   :  { %439 = vsyncpa [#allocation6], 1 }
 0x339   :  { %440 = vsyncpa [#allocation9], 1 }
 0x33a   :  { %441 = vsyncpa [#allocation4], 1 }

</bundles_post_ra>
